<compile_context>
chip_gen: v6e
topology: v6e:2x2x1
jax: 0.10.0
libtpu: 0.0.40
codegen_flags: <defaults>
</compile_context>

<pallas_src>
import functools
import math

import jax
import jax.numpy as jnp
import numpy as np
from jax.experimental import pallas as pl
from jax.experimental.pallas import tpu as pltpu

_VMEM = pl.BlockSpec(memory_space=pltpu.MemorySpace.VMEM)


# ----------------------------------------------------------------------------- #
# Per-layer gaussian (RBF) kernel matrix, computed fully in vregs.
# ----------------------------------------------------------------------------- #
def _rbf_kernel_matrix(x, eye, kernel_mul, kernel_num, fix_sigma):
    B = x.shape[0]
    gram = jax.lax.dot_general(x, x, (((1,), (1,)), ((), ())),
                               preferred_element_type=jnp.float32)        # (B, B)
    gdiag = gram * eye                                                    # diag(gram)
    xx = jnp.sum(gdiag, axis=1, keepdims=True)                            # (B, 1) row ||x||^2
    yy = jnp.sum(gdiag, axis=0, keepdims=True)                            # (1, B) == xx.T
    dist = xx + yy - 2.0 * gram                                           # squared distances

    denom_pow = kernel_mul ** (kernel_num // 2)
    # NB: python truthiness on fix_sigma (fix_sigma=0.0 falls back to auto bandwidth),
    #     matching the torch reference.
    if fix_sigma:
        inv_bw0 = denom_pow / float(fix_sigma)                            # static scalar
    else:
        bw0 = jnp.sum(dist, keepdims=True) * (1.0 / (float(B * B - B) * denom_pow))
        inv_bw0 = pl.reciprocal(bw0)                                      # (1, 1)

    acc = jnp.zeros_like(dist)
    for i in range(kernel_num):                                           # static unroll
        acc = acc + jnp.exp(dist * (inv_bw0 * (-1.0 / (kernel_mul ** i))))
    return acc * (1.0 / float(kernel_num))


# ----------------------------------------------------------------------------- #
# Fused kernel: cosine sim + joint RBF kernels + JRS neg-pair mean + margin CE.
# ----------------------------------------------------------------------------- #
def _fused_loss_kernel(*refs, num_feats, scale, M, alpha, layer_params):
    # refs = (tgt_ref, emb_ref, fc_ref, feat_ref_0..feat_ref_{F-1}, out_ref)
    tgt_ref, emb_ref, fc_ref = refs[0], refs[1], refs[2]
    feat_refs = refs[3:3 + num_feats]
    out_ref = refs[3 + num_feats]

    emb = emb_ref[...].astype(jnp.float32)                                # (B, dim)
    fc = fc_ref[...].astype(jnp.float32)                                  # (dim, cN)
    tcol = tgt_ref[...]                                                   # (B, 1) int32
    B = emb.shape[0]
    cN = fc.shape[1]

    # ---- cosine-softmax similarity: normalize AFTER the matmul (same math) ----
    sim_raw = jnp.dot(emb, fc, preferred_element_type=jnp.float32)        # (B, cN)
    colsq = jnp.sum(fc * fc, axis=0, keepdims=True)                       # (1, cN)
    inv_norm = jax.lax.rsqrt(jnp.maximum(colsq, 1e-24))                   # == 1/max(||col||, 1e-12)
    sim = sim_raw * inv_norm                                              # (B, cN)

    # ---- shared (B,B) identity mask (diag extraction) --------------------------
    eye = (jax.lax.broadcasted_iota(jnp.int32, (B, B), 0)
           == jax.lax.broadcasted_iota(jnp.int32, (B, B), 1)).astype(jnp.float32)

    # ---- JRS joint kernel across all layers (feats..., emb, simClass) ----------
    sources = [r[...].astype(jnp.float32) for r in feat_refs] + [emb, sim]
    joint = None
    for src, (km, kn, fs) in zip(sources, layer_params):
        k = _rbf_kernel_matrix(src, eye, km, kn, fs)
        joint = k if joint is None else joint * k                         # (B, B)

    # ---- one-hot targets; same-class mask via its Gram -------------------------
    cls = jax.lax.broadcasted_iota(jnp.int32, (B, cN), 1)
    onehot = (cls == tcol).astype(jnp.float32)                            # (B, cN)
    same = jax.lax.dot_general(onehot, onehot, (((1,), (1,)), ((), ())),
                               preferred_element_type=jnp.float32)        # (B, B)
    neg = 1.0 - same
    # TODO(synk): 0/0 -> NaN if every sample in the batch shares one label (same as torch ref).
    jrs = jnp.sum(joint * neg, keepdims=True) / jnp.sum(neg, keepdims=True)   # (1, 1)

    # ---- margin cross entropy ---------------------------------------------------
    logits = scale * (sim - M * onehot)
    mx = jnp.max(logits, axis=1, keepdims=True)
    lse = mx + jnp.log(jnp.sum(jnp.exp(logits - mx), axis=1, keepdims=True))  # (B, 1)
    tgt_logit = jnp.sum(logits * onehot, axis=1, keepdims=True)               # (B, 1)
    soft = jnp.sum(lse - tgt_logit, keepdims=True) * (1.0 / float(B))         # (1, 1)

    out_ref[...] = soft + alpha * jrs


class OurLossPallas:
    """Pallas/JAX port of OurLoss (CosineSoftmax + JRS), fused into one kernel."""

    def __init__(self, scale, M, dim, cN, kernel_muls, kernel_nums, fix_sigmas, alpha, key):
        self.scale = float(scale)
        self.M = float(M)
        self.cN = int(cN)
        self.layer_params = tuple(
            (float(km), int(kn), fs)
            for km, kn, fs in zip(kernel_muls, kernel_nums, fix_sigmas))
        self.alpha = float(alpha)
        # kaiming_uniform_(a=sqrt(5)) on a (dim, cN) tensor -> U(-1/sqrt(fan_in), 1/sqrt(fan_in)),
        # fan_in = cN.  Deterministic init from the supplied key.
        bound = 1.0 / math.sqrt(cN)
        self.fc = jax.random.uniform(key, (dim, cN), jnp.float32, -bound, bound)

    def __call__(self, feats, emb, target):
        feats = list(feats)
        num_feats = len(feats)
        B = emb.shape[0]
        tcol = target.reshape(B, 1).astype(jnp.int32)

        body = functools.partial(
            _fused_loss_kernel,
            num_feats=num_feats,
            scale=self.scale, M=self.M, alpha=self.alpha,
            layer_params=self.layer_params)

        loss = pl.pallas_call(
            body,
            out_shape=jax.ShapeDtypeStruct((1, 1), jnp.float32),
            in_specs=[_VMEM] * (3 + num_feats),
            out_specs=_VMEM,
        )(tcol, emb, self.fc, *feats)
        return loss[0, 0]


# ----------------------------------------------------------------------------- #
# Pure-JAX reference (mirrors the PyTorch math) for correctness checking
# ----------------------------------------------------------------------------- #
def reference_loss(fc, feats, emb, target, *, scale, M, cN,
                   kernel_muls, kernel_nums, fix_sigmas, alpha):
    centers = fc / jnp.maximum(jnp.linalg.norm(fc, axis=0, keepdims=True), 1e-12)
    sim = emb @ centers
    srcs = list(feats) + [emb, sim]
    B = emb.shape[0]
    joint = None
    for s, km, kn, fs in zip(srcs, kernel_muls, kernel_nums, fix_sigmas):
        xx = jnp.sum(s * s, axis=1, keepdims=True)
        dist = xx + xx.T - 2.0 * (s @ s.T)
        bw = jnp.float32(fs) if fs else jnp.sum(dist) / (B * B - B)
        bw = bw / (km ** (kn // 2))
        k = sum(jnp.exp(-dist / (bw * km ** i)) for i in range(kn)) / kn
        joint = k if joint is None else joint * k
    neg = (target[:, None] != target[None, :]).astype(jnp.float32)
    jrs = jnp.sum(joint * neg) / jnp.sum(neg)
    onehot = jax.nn.one_hot(target, cN, dtype=jnp.float32)
    logits = scale * (sim - M * onehot)
    ce = jnp.mean(jax.nn.logsumexp(logits, axis=1) - jnp.sum(logits * onehot, axis=1))
    return ce + alpha * jrs


if __name__ == "__main__":
    key = jax.random.PRNGKey(0)
    k_fc, k_f0, k_f1, k_emb, k_t = jax.random.split(key, 5)

    B, dim, cN = 8, 32, 8
    feats = [
        jax.random.normal(k_f0, (B, 16), jnp.float32),
        jax.random.normal(k_f1, (B, 64), jnp.float32),
    ]
    emb = jax.random.normal(k_emb, (B, dim), jnp.float32)
    target = jax.random.randint(k_t, (B,), 0, cN, jnp.int32)
    target = target.at[0].set(0).at[1].set(1)   # guarantee at least one negative pair

    # JRS config covers len(feats) + 2 layers (feats..., emb, simClass)
    kernel_muls = [2.0, 2.0, 2.0, 2.0]
    kernel_nums = [5, 5, 3, 5]
    fix_sigmas = [None, None, 1.0, None]

    loss_mod = OurLossPallas(scale=30.0, M=0.3, dim=dim, cN=cN,
                             kernel_muls=kernel_muls, kernel_nums=kernel_nums,
                             fix_sigmas=fix_sigmas, alpha=0.1, key=k_fc)

    loss = loss_mod(feats, emb, target)
    jax.block_until_ready(loss)

    ref = reference_loss(loss_mod.fc, feats, emb, target, scale=30.0, M=0.3, cN=cN,
                         kernel_muls=kernel_muls, kernel_nums=kernel_nums,
                         fix_sigmas=fix_sigmas, alpha=0.1)
    np.testing.assert_allclose(np.asarray(loss), np.asarray(ref), rtol=1e-3, atol=1e-3)
    print("KERNEL_OK")
</pallas_src>

<mosaic_0001>
module attributes {stable_mosaic.version = 11 : i64} {
  func.func @_fused_loss_kernel(%arg0: memref<8x1xi32, #tpu.memory_space<vmem>>, %arg1: memref<8x32xf32, #tpu.memory_space<vmem>>, %arg2: memref<32x8xf32, #tpu.memory_space<vmem>>, %arg3: memref<8x16xf32, #tpu.memory_space<vmem>>, %arg4: memref<8x64xf32, #tpu.memory_space<vmem>>, %arg5: memref<1x1xf32, #tpu.memory_space<vmem>>) attributes {dimension_semantics = [], scalar_prefetch = 0 : i64, scratch_operands = 0 : i64, tpu.core_type = #tpu.core_type<tc>} {
    %c0 = arith.constant 0 : index
    %c0_0 = arith.constant 0 : index
    %0 = vector.load %arg1[%c0, %c0_0] : memref<8x32xf32, #tpu.memory_space<vmem>>, vector<8x32xf32>
    %c0_1 = arith.constant 0 : index
    %c0_2 = arith.constant 0 : index
    %1 = vector.load %arg2[%c0_1, %c0_2] : memref<32x8xf32, #tpu.memory_space<vmem>>, vector<32x8xf32>
    %c0_3 = arith.constant 0 : index
    %c0_4 = arith.constant 0 : index
    %2 = vector.load %arg0[%c0_3, %c0_4] : memref<8x1xi32, #tpu.memory_space<vmem>>, vector<8x1xi32>
    %cst = arith.constant dense<0.000000e+00> : vector<8x8xf32>
    %3 = tpu.matmul %0, %1, %cst {dimension_numbers = #tpu.dot_dimension_numbers<[1], [0], [0], [1], [0, 0, 1, 1], [], []>} : vector<8x32xf32>, vector<32x8xf32>, vector<8x8xf32> -> vector<8x8xf32>
    %4 = arith.mulf %1, %1 : vector<32x8xf32>
    %cst_5 = arith.constant dense<0.000000e+00> : vector<8xf32>
    %5 = vector.multi_reduction <add>, %4, %cst_5 [0] : vector<32x8xf32> to vector<8xf32>
    %6 = vector.shape_cast %5 : vector<8xf32> to vector<1x8xf32>
    %cst_6 = arith.constant 1.000000e-24 : f32
    %7 = vector.broadcast %cst_6 : f32 to vector<1x8xf32>
    %8 = arith.maximumf %6, %7 : vector<1x8xf32>
    %9 = math.rsqrt %8 : vector<1x8xf32>
    %10 = vector.broadcast %9 : vector<1x8xf32> to vector<8x8xf32>
    %11 = arith.mulf %3, %10 : vector<8x8xf32>
    %12 = tpu.iota {dimensions = array<i32: 0>} : vector<8x8xi32>
    %13 = tpu.iota {dimensions = array<i32: 1>} : vector<8x8xi32>
    %14 = arith.cmpi eq, %12, %13 : vector<8x8xi32>
    %15 = arith.extui %14 : vector<8x8xi1> to vector<8x8xi32>
    %16 = arith.sitofp %15 : vector<8x8xi32> to vector<8x8xf32>
    %c0_7 = arith.constant 0 : index
    %c0_8 = arith.constant 0 : index
    %17 = vector.load %arg3[%c0_7, %c0_8] : memref<8x16xf32, #tpu.memory_space<vmem>>, vector<8x16xf32>
    %c0_9 = arith.constant 0 : index
    %c0_10 = arith.constant 0 : index
    %18 = vector.load %arg4[%c0_9, %c0_10] : memref<8x64xf32, #tpu.memory_space<vmem>>, vector<8x64xf32>
    %cst_11 = arith.constant dense<0.000000e+00> : vector<8x8xf32>
    %19 = tpu.matmul %17, %17, %cst_11 {dimension_numbers = #tpu.dot_dimension_numbers<[1], [1], [0], [0], [0, 0, 1, 0], [], []>} : vector<8x16xf32>, vector<8x16xf32>, vector<8x8xf32> -> vector<8x8xf32>
    %20 = arith.mulf %19, %16 : vector<8x8xf32>
    %cst_12 = arith.constant dense<0.000000e+00> : vector<8xf32>
    %21 = vector.multi_reduction <add>, %20, %cst_12 [1] : vector<8x8xf32> to vector<8xf32>
    %22 = vector.shape_cast %21 : vector<8xf32> to vector<8x1xf32>
    %cst_13 = arith.constant dense<0.000000e+00> : vector<8xf32>
    %23 = vector.multi_reduction <add>, %20, %cst_13 [0] : vector<8x8xf32> to vector<8xf32>
    %24 = vector.shape_cast %23 : vector<8xf32> to vector<1x8xf32>
    %25 = vector.broadcast %22 : vector<8x1xf32> to vector<8x8xf32>
    %26 = vector.broadcast %24 : vector<1x8xf32> to vector<8x8xf32>
    %27 = arith.addf %25, %26 : vector<8x8xf32>
    %cst_14 = arith.constant 2.000000e+00 : f32
    %28 = vector.broadcast %cst_14 : f32 to vector<8x8xf32>
    %29 = arith.mulf %28, %19 : vector<8x8xf32>
    %30 = arith.subf %27, %29 : vector<8x8xf32>
    %31 = vector.shape_cast %30 : vector<8x8xf32> to vector<1x8x8xf32>
    %cst_15 = arith.constant dense<0.000000e+00> : vector<1xf32>
    %32 = vector.multi_reduction <add>, %31, %cst_15 [1, 2] : vector<1x8x8xf32> to vector<1xf32>
    %33 = vector.shape_cast %32 : vector<1xf32> to vector<1x1x1xf32>
    %34 = vector.extract %33[0, 0, 0] : f32 from vector<1x1x1xf32>
    %35 = vector.broadcast %34 : f32 to vector<1x1xf32>
    %cst_16 = arith.constant 0.00446428591 : f32
    %36 = vector.broadcast %cst_16 : f32 to vector<1x1xf32>
    %37 = arith.mulf %35, %36 : vector<1x1xf32>
    %38 = tpu.reciprocal %37 : vector<1x1xf32> -> vector<1x1xf32>
    %cst_17 = arith.constant 0.000000e+00 : f32
    %39 = vector.broadcast %cst_17 : f32 to vector<8x8xf32>
    %cst_18 = arith.constant -1.000000e+00 : f32
    %40 = vector.broadcast %cst_18 : f32 to vector<1x1xf32>
    %41 = arith.mulf %38, %40 : vector<1x1xf32>
    %42 = vector.broadcast %41 : vector<1x1xf32> to vector<8x8xf32>
    %43 = arith.mulf %30, %42 : vector<8x8xf32>
    %44 = math.exp %43 : vector<8x8xf32>
    %45 = arith.addf %39, %44 : vector<8x8xf32>
    %cst_19 = arith.constant -5.000000e-01 : f32
    %46 = vector.broadcast %cst_19 : f32 to vector<1x1xf32>
    %47 = arith.mulf %38, %46 : vector<1x1xf32>
    %48 = vector.broadcast %47 : vector<1x1xf32> to vector<8x8xf32>
    %49 = arith.mulf %30, %48 : vector<8x8xf32>
    %50 = math.exp %49 : vector<8x8xf32>
    %51 = arith.addf %45, %50 : vector<8x8xf32>
    %cst_20 = arith.constant -2.500000e-01 : f32
    %52 = vector.broadcast %cst_20 : f32 to vector<1x1xf32>
    %53 = arith.mulf %38, %52 : vector<1x1xf32>
    %54 = vector.broadcast %53 : vector<1x1xf32> to vector<8x8xf32>
    %55 = arith.mulf %30, %54 : vector<8x8xf32>
    %56 = math.exp %55 : vector<8x8xf32>
    %57 = arith.addf %51, %56 : vector<8x8xf32>
    %cst_21 = arith.constant -1.250000e-01 : f32
    %58 = vector.broadcast %cst_21 : f32 to vector<1x1xf32>
    %59 = arith.mulf %38, %58 : vector<1x1xf32>
    %60 = vector.broadcast %59 : vector<1x1xf32> to vector<8x8xf32>
    %61 = arith.mulf %30, %60 : vector<8x8xf32>
    %62 = math.exp %61 : vector<8x8xf32>
    %63 = arith.addf %57, %62 : vector<8x8xf32>
    %cst_22 = arith.constant -6.250000e-02 : f32
    %64 = vector.broadcast %cst_22 : f32 to vector<1x1xf32>
    %65 = arith.mulf %38, %64 : vector<1x1xf32>
    %66 = vector.broadcast %65 : vector<1x1xf32> to vector<8x8xf32>
    %67 = arith.mulf %30, %66 : vector<8x8xf32>
    %68 = math.exp %67 : vector<8x8xf32>
    %69 = arith.addf %63, %68 : vector<8x8xf32>
    %cst_23 = arith.constant 2.000000e-01 : f32
    %70 = vector.broadcast %cst_23 : f32 to vector<8x8xf32>
    %71 = arith.mulf %69, %70 : vector<8x8xf32>
    %cst_24 = arith.constant dense<0.000000e+00> : vector<8x8xf32>
    %72 = tpu.matmul %18, %18, %cst_24 {dimension_numbers = #tpu.dot_dimension_numbers<[1], [1], [0], [0], [0, 0, 1, 0], [], []>} : vector<8x64xf32>, vector<8x64xf32>, vector<8x8xf32> -> vector<8x8xf32>
    %73 = arith.mulf %72, %16 : vector<8x8xf32>
    %cst_25 = arith.constant dense<0.000000e+00> : vector<8xf32>
    %74 = vector.multi_reduction <add>, %73, %cst_25 [1] : vector<8x8xf32> to vector<8xf32>
    %75 = vector.shape_cast %74 : vector<8xf32> to vector<8x1xf32>
    %cst_26 = arith.constant dense<0.000000e+00> : vector<8xf32>
    %76 = vector.multi_reduction <add>, %73, %cst_26 [0] : vector<8x8xf32> to vector<8xf32>
    %77 = vector.shape_cast %76 : vector<8xf32> to vector<1x8xf32>
    %78 = vector.broadcast %75 : vector<8x1xf32> to vector<8x8xf32>
    %79 = vector.broadcast %77 : vector<1x8xf32> to vector<8x8xf32>
    %80 = arith.addf %78, %79 : vector<8x8xf32>
    %cst_27 = arith.constant 2.000000e+00 : f32
    %81 = vector.broadcast %cst_27 : f32 to vector<8x8xf32>
    %82 = arith.mulf %81, %72 : vector<8x8xf32>
    %83 = arith.subf %80, %82 : vector<8x8xf32>
    %84 = vector.shape_cast %83 : vector<8x8xf32> to vector<1x8x8xf32>
    %cst_28 = arith.constant dense<0.000000e+00> : vector<1xf32>
    %85 = vector.multi_reduction <add>, %84, %cst_28 [1, 2] : vector<1x8x8xf32> to vector<1xf32>
    %86 = vector.shape_cast %85 : vector<1xf32> to vector<1x1x1xf32>
    %87 = vector.extract %86[0, 0, 0] : f32 from vector<1x1x1xf32>
    %88 = vector.broadcast %87 : f32 to vector<1x1xf32>
    %cst_29 = arith.constant 0.00446428591 : f32
    %89 = vector.broadcast %cst_29 : f32 to vector<1x1xf32>
    %90 = arith.mulf %88, %89 : vector<1x1xf32>
    %91 = tpu.reciprocal %90 : vector<1x1xf32> -> vector<1x1xf32>
    %cst_30 = arith.constant 0.000000e+00 : f32
    %92 = vector.broadcast %cst_30 : f32 to vector<8x8xf32>
    %cst_31 = arith.constant -1.000000e+00 : f32
    %93 = vector.broadcast %cst_31 : f32 to vector<1x1xf32>
    %94 = arith.mulf %91, %93 : vector<1x1xf32>
    %95 = vector.broadcast %94 : vector<1x1xf32> to vector<8x8xf32>
    %96 = arith.mulf %83, %95 : vector<8x8xf32>
    %97 = math.exp %96 : vector<8x8xf32>
    %98 = arith.addf %92, %97 : vector<8x8xf32>
    %cst_32 = arith.constant -5.000000e-01 : f32
    %99 = vector.broadcast %cst_32 : f32 to vector<1x1xf32>
    %100 = arith.mulf %91, %99 : vector<1x1xf32>
    %101 = vector.broadcast %100 : vector<1x1xf32> to vector<8x8xf32>
    %102 = arith.mulf %83, %101 : vector<8x8xf32>
    %103 = math.exp %102 : vector<8x8xf32>
    %104 = arith.addf %98, %103 : vector<8x8xf32>
    %cst_33 = arith.constant -2.500000e-01 : f32
    %105 = vector.broadcast %cst_33 : f32 to vector<1x1xf32>
    %106 = arith.mulf %91, %105 : vector<1x1xf32>
    %107 = vector.broadcast %106 : vector<1x1xf32> to vector<8x8xf32>
    %108 = arith.mulf %83, %107 : vector<8x8xf32>
    %109 = math.exp %108 : vector<8x8xf32>
    %110 = arith.addf %104, %109 : vector<8x8xf32>
    %cst_34 = arith.constant -1.250000e-01 : f32
    %111 = vector.broadcast %cst_34 : f32 to vector<1x1xf32>
    %112 = arith.mulf %91, %111 : vector<1x1xf32>
    %113 = vector.broadcast %112 : vector<1x1xf32> to vector<8x8xf32>
    %114 = arith.mulf %83, %113 : vector<8x8xf32>
    %115 = math.exp %114 : vector<8x8xf32>
    %116 = arith.addf %110, %115 : vector<8x8xf32>
    %cst_35 = arith.constant -6.250000e-02 : f32
    %117 = vector.broadcast %cst_35 : f32 to vector<1x1xf32>
    %118 = arith.mulf %91, %117 : vector<1x1xf32>
    %119 = vector.broadcast %118 : vector<1x1xf32> to vector<8x8xf32>
    %120 = arith.mulf %83, %119 : vector<8x8xf32>
    %121 = math.exp %120 : vector<8x8xf32>
    %122 = arith.addf %116, %121 : vector<8x8xf32>
    %cst_36 = arith.constant 2.000000e-01 : f32
    %123 = vector.broadcast %cst_36 : f32 to vector<8x8xf32>
    %124 = arith.mulf %122, %123 : vector<8x8xf32>
    %125 = arith.mulf %71, %124 : vector<8x8xf32>
    %cst_37 = arith.constant dense<0.000000e+00> : vector<8x8xf32>
    %126 = tpu.matmul %0, %0, %cst_37 {dimension_numbers = #tpu.dot_dimension_numbers<[1], [1], [0], [0], [0, 0, 1, 0], [], []>} : vector<8x32xf32>, vector<8x32xf32>, vector<8x8xf32> -> vector<8x8xf32>
    %127 = arith.mulf %126, %16 : vector<8x8xf32>
    %cst_38 = arith.constant dense<0.000000e+00> : vector<8xf32>
    %128 = vector.multi_reduction <add>, %127, %cst_38 [1] : vector<8x8xf32> to vector<8xf32>
    %129 = vector.shape_cast %128 : vector<8xf32> to vector<8x1xf32>
    %cst_39 = arith.constant dense<0.000000e+00> : vector<8xf32>
    %130 = vector.multi_reduction <add>, %127, %cst_39 [0] : vector<8x8xf32> to vector<8xf32>
    %131 = vector.shape_cast %130 : vector<8xf32> to vector<1x8xf32>
    %132 = vector.broadcast %129 : vector<8x1xf32> to vector<8x8xf32>
    %133 = vector.broadcast %131 : vector<1x8xf32> to vector<8x8xf32>
    %134 = arith.addf %132, %133 : vector<8x8xf32>
    %cst_40 = arith.constant 2.000000e+00 : f32
    %135 = vector.broadcast %cst_40 : f32 to vector<8x8xf32>
    %136 = arith.mulf %135, %126 : vector<8x8xf32>
    %137 = arith.subf %134, %136 : vector<8x8xf32>
    %cst_41 = arith.constant 0.000000e+00 : f32
    %138 = vector.broadcast %cst_41 : f32 to vector<8x8xf32>
    %cst_42 = arith.constant -2.000000e+00 : f32
    %139 = vector.broadcast %cst_42 : f32 to vector<8x8xf32>
    %140 = arith.mulf %137, %139 : vector<8x8xf32>
    %141 = math.exp %140 : vector<8x8xf32>
    %142 = arith.addf %138, %141 : vector<8x8xf32>
    %cst_43 = arith.constant -1.000000e+00 : f32
    %143 = vector.broadcast %cst_43 : f32 to vector<8x8xf32>
    %144 = arith.mulf %137, %143 : vector<8x8xf32>
    %145 = math.exp %144 : vector<8x8xf32>
    %146 = arith.addf %142, %145 : vector<8x8xf32>
    %cst_44 = arith.constant -5.000000e-01 : f32
    %147 = vector.broadcast %cst_44 : f32 to vector<8x8xf32>
    %148 = arith.mulf %137, %147 : vector<8x8xf32>
    %149 = math.exp %148 : vector<8x8xf32>
    %150 = arith.addf %146, %149 : vector<8x8xf32>
    %cst_45 = arith.constant 0.333333343 : f32
    %151 = vector.broadcast %cst_45 : f32 to vector<8x8xf32>
    %152 = arith.mulf %150, %151 : vector<8x8xf32>
    %153 = arith.mulf %125, %152 : vector<8x8xf32>
    %cst_46 = arith.constant dense<0.000000e+00> : vector<8x8xf32>
    %154 = tpu.matmul %11, %11, %cst_46 {dimension_numbers = #tpu.dot_dimension_numbers<[1], [1], [0], [0], [0, 0, 1, 0], [], []>} : vector<8x8xf32>, vector<8x8xf32>, vector<8x8xf32> -> vector<8x8xf32>
    %155 = arith.mulf %154, %16 : vector<8x8xf32>
    %cst_47 = arith.constant dense<0.000000e+00> : vector<8xf32>
    %156 = vector.multi_reduction <add>, %155, %cst_47 [1] : vector<8x8xf32> to vector<8xf32>
    %157 = vector.shape_cast %156 : vector<8xf32> to vector<8x1xf32>
    %cst_48 = arith.constant dense<0.000000e+00> : vector<8xf32>
    %158 = vector.multi_reduction <add>, %155, %cst_48 [0] : vector<8x8xf32> to vector<8xf32>
    %159 = vector.shape_cast %158 : vector<8xf32> to vector<1x8xf32>
    %160 = vector.broadcast %157 : vector<8x1xf32> to vector<8x8xf32>
    %161 = vector.broadcast %159 : vector<1x8xf32> to vector<8x8xf32>
    %162 = arith.addf %160, %161 : vector<8x8xf32>
    %cst_49 = arith.constant 2.000000e+00 : f32
    %163 = vector.broadcast %cst_49 : f32 to vector<8x8xf32>
    %164 = arith.mulf %163, %154 : vector<8x8xf32>
    %165 = arith.subf %162, %164 : vector<8x8xf32>
    %166 = vector.shape_cast %165 : vector<8x8xf32> to vector<1x8x8xf32>
    %cst_50 = arith.constant dense<0.000000e+00> : vector<1xf32>
    %167 = vector.multi_reduction <add>, %166, %cst_50 [1, 2] : vector<1x8x8xf32> to vector<1xf32>
    %168 = vector.shape_cast %167 : vector<1xf32> to vector<1x1x1xf32>
    %169 = vector.extract %168[0, 0, 0] : f32 from vector<1x1x1xf32>
    %170 = vector.broadcast %169 : f32 to vector<1x1xf32>
    %cst_51 = arith.constant 0.00446428591 : f32
    %171 = vector.broadcast %cst_51 : f32 to vector<1x1xf32>
    %172 = arith.mulf %170, %171 : vector<1x1xf32>
    %173 = tpu.reciprocal %172 : vector<1x1xf32> -> vector<1x1xf32>
    %cst_52 = arith.constant 0.000000e+00 : f32
    %174 = vector.broadcast %cst_52 : f32 to vector<8x8xf32>
    %cst_53 = arith.constant -1.000000e+00 : f32
    %175 = vector.broadcast %cst_53 : f32 to vector<1x1xf32>
    %176 = arith.mulf %173, %175 : vector<1x1xf32>
    %177 = vector.broadcast %176 : vector<1x1xf32> to vector<8x8xf32>
    %178 = arith.mulf %165, %177 : vector<8x8xf32>
    %179 = math.exp %178 : vector<8x8xf32>
    %180 = arith.addf %174, %179 : vector<8x8xf32>
    %cst_54 = arith.constant -5.000000e-01 : f32
    %181 = vector.broadcast %cst_54 : f32 to vector<1x1xf32>
    %182 = arith.mulf %173, %181 : vector<1x1xf32>
    %183 = vector.broadcast %182 : vector<1x1xf32> to vector<8x8xf32>
    %184 = arith.mulf %165, %183 : vector<8x8xf32>
    %185 = math.exp %184 : vector<8x8xf32>
    %186 = arith.addf %180, %185 : vector<8x8xf32>
    %cst_55 = arith.constant -2.500000e-01 : f32
    %187 = vector.broadcast %cst_55 : f32 to vector<1x1xf32>
    %188 = arith.mulf %173, %187 : vector<1x1xf32>
    %189 = vector.broadcast %188 : vector<1x1xf32> to vector<8x8xf32>
    %190 = arith.mulf %165, %189 : vector<8x8xf32>
    %191 = math.exp %190 : vector<8x8xf32>
    %192 = arith.addf %186, %191 : vector<8x8xf32>
    %cst_56 = arith.constant -1.250000e-01 : f32
    %193 = vector.broadcast %cst_56 : f32 to vector<1x1xf32>
    %194 = arith.mulf %173, %193 : vector<1x1xf32>
    %195 = vector.broadcast %194 : vector<1x1xf32> to vector<8x8xf32>
    %196 = arith.mulf %165, %195 : vector<8x8xf32>
    %197 = math.exp %196 : vector<8x8xf32>
    %198 = arith.addf %192, %197 : vector<8x8xf32>
    %cst_57 = arith.constant -6.250000e-02 : f32
    %199 = vector.broadcast %cst_57 : f32 to vector<1x1xf32>
    %200 = arith.mulf %173, %199 : vector<1x1xf32>
    %201 = vector.broadcast %200 : vector<1x1xf32> to vector<8x8xf32>
    %202 = arith.mulf %165, %201 : vector<8x8xf32>
    %203 = math.exp %202 : vector<8x8xf32>
    %204 = arith.addf %198, %203 : vector<8x8xf32>
    %cst_58 = arith.constant 2.000000e-01 : f32
    %205 = vector.broadcast %cst_58 : f32 to vector<8x8xf32>
    %206 = arith.mulf %204, %205 : vector<8x8xf32>
    %207 = arith.mulf %153, %206 : vector<8x8xf32>
    %208 = tpu.iota {dimensions = array<i32: 1>} : vector<8x8xi32>
    %209 = vector.broadcast %2 : vector<8x1xi32> to vector<8x8xi32>
    %210 = arith.cmpi eq, %208, %209 : vector<8x8xi32>
    %211 = arith.extui %210 : vector<8x8xi1> to vector<8x8xi32>
    %212 = arith.sitofp %211 : vector<8x8xi32> to vector<8x8xf32>
    %cst_59 = arith.constant dense<0.000000e+00> : vector<8x8xf32>
    %213 = tpu.matmul %212, %212, %cst_59 {dimension_numbers = #tpu.dot_dimension_numbers<[1], [1], [0], [0], [0, 0, 1, 0], [], []>} : vector<8x8xf32>, vector<8x8xf32>, vector<8x8xf32> -> vector<8x8xf32>
    %cst_60 = arith.constant 1.000000e+00 : f32
    %214 = vector.broadcast %cst_60 : f32 to vector<8x8xf32>
    %215 = arith.subf %214, %213 : vector<8x8xf32>
    %216 = arith.mulf %207, %215 : vector<8x8xf32>
    %217 = vector.shape_cast %216 : vector<8x8xf32> to vector<1x8x8xf32>
    %cst_61 = arith.constant dense<0.000000e+00> : vector<1xf32>
    %218 = vector.multi_reduction <add>, %217, %cst_61 [1, 2] : vector<1x8x8xf32> to vector<1xf32>
    %219 = vector.shape_cast %218 : vector<1xf32> to vector<1x1x1xf32>
    %220 = vector.extract %219[0, 0, 0] : f32 from vector<1x1x1xf32>
    %221 = vector.broadcast %220 : f32 to vector<1x1xf32>
    %222 = vector.shape_cast %215 : vector<8x8xf32> to vector<1x8x8xf32>
    %cst_62 = arith.constant dense<0.000000e+00> : vector<1xf32>
    %223 = vector.multi_reduction <add>, %222, %cst_62 [1, 2] : vector<1x8x8xf32> to vector<1xf32>
    %224 = vector.shape_cast %223 : vector<1xf32> to vector<1x1x1xf32>
    %225 = vector.extract %224[0, 0, 0] : f32 from vector<1x1x1xf32>
    %226 = vector.broadcast %225 : f32 to vector<1x1xf32>
    %227 = arith.divf %221, %226 : vector<1x1xf32>
    %cst_63 = arith.constant 3.000000e-01 : f32
    %228 = vector.broadcast %cst_63 : f32 to vector<8x8xf32>
    %229 = arith.mulf %228, %212 : vector<8x8xf32>
    %230 = arith.subf %11, %229 : vector<8x8xf32>
    %cst_64 = arith.constant 3.000000e+01 : f32
    %231 = vector.broadcast %cst_64 : f32 to vector<8x8xf32>
    %232 = arith.mulf %231, %230 : vector<8x8xf32>
    %cst_65 = arith.constant dense<0xFF800000> : vector<8xf32>
    %233 = vector.multi_reduction <maximumf>, %232, %cst_65 [1] : vector<8x8xf32> to vector<8xf32>
    %234 = vector.shape_cast %233 : vector<8xf32> to vector<8x1xf32>
    %235 = vector.broadcast %234 : vector<8x1xf32> to vector<8x8xf32>
    %236 = arith.subf %232, %235 : vector<8x8xf32>
    %237 = math.exp %236 : vector<8x8xf32>
    %cst_66 = arith.constant dense<0.000000e+00> : vector<8xf32>
    %238 = vector.multi_reduction <add>, %237, %cst_66 [1] : vector<8x8xf32> to vector<8xf32>
    %239 = vector.shape_cast %238 : vector<8xf32> to vector<8x1xf32>
    %240 = math.log %239 : vector<8x1xf32>
    %241 = arith.addf %234, %240 : vector<8x1xf32>
    %242 = arith.mulf %232, %212 : vector<8x8xf32>
    %cst_67 = arith.constant dense<0.000000e+00> : vector<8xf32>
    %243 = vector.multi_reduction <add>, %242, %cst_67 [1] : vector<8x8xf32> to vector<8xf32>
    %244 = vector.shape_cast %243 : vector<8xf32> to vector<8x1xf32>
    %245 = arith.subf %241, %244 : vector<8x1xf32>
    %246 = vector.shape_cast %245 : vector<8x1xf32> to vector<1x8x1xf32>
    %cst_68 = arith.constant dense<0.000000e+00> : vector<1xf32>
    %247 = vector.multi_reduction <add>, %246, %cst_68 [1, 2] : vector<1x8x1xf32> to vector<1xf32>
    %248 = vector.shape_cast %247 : vector<1xf32> to vector<1x1x1xf32>
    %249 = vector.extract %248[0, 0, 0] : f32 from vector<1x1x1xf32>
    %250 = vector.broadcast %249 : f32 to vector<1x1xf32>
    %cst_69 = arith.constant 1.250000e-01 : f32
    %251 = vector.broadcast %cst_69 : f32 to vector<1x1xf32>
    %252 = arith.mulf %250, %251 : vector<1x1xf32>
    %cst_70 = arith.constant 1.000000e-01 : f32
    %253 = vector.broadcast %cst_70 : f32 to vector<1x1xf32>
    %254 = arith.mulf %253, %227 : vector<1x1xf32>
    %255 = arith.addf %252, %254 : vector<1x1xf32>
    %c0_71 = arith.constant 0 : index
    %c0_72 = arith.constant 0 : index
    %256 = vector.load %arg5[%c0_71, %c0_72] : memref<1x1xf32, #tpu.memory_space<vmem>>, vector<1x1xf32>
    tpu.vector_store %arg5[%c0_71, %c0_72], %255 {strides = array<i32>} : memref<1x1xf32, #tpu.memory_space<vmem>>, vector<1x1xf32>,
    return
  }
}

</mosaic_0001>

<bundles_post_ra>
// kernel: tpu_custom_call.1
= control target key start
LH: loop header
LB: loop body
LE: loop exit
PB: predicated region body
PF: predicated region fallthrough
CT: control target
= control target key end

     0   :  { %vm105_vm0 = vcmask 64512   ;;  %v122_v3 = vlaneseq  ;;  %v916_v4 = vmov 0.0   ;;  %vm917_vm1 = vmmov 0   ;;  %s1079_s0 = inlined_call_operand.vmem [shape: s32[8,1], index: 0, kind: input, shape index: {}]   ;;  %s1080_s1 = inlined_call_operand.vmem [shape: f32[8,32], index: 1, kind: input, shape index: {}]   ;;  %s1081_s2 = inlined_call_operand.vmem [shape: f32[32,8], index: 2, kind: input, shape index: {}]   ;;  %s1082_s3 = inlined_call_operand.vmem [shape: f32[8,16], index: 3, kind: input, shape index: {}]   ;;  %s1083_s4 = inlined_call_operand.vmem [shape: f32[8,64], index: 4, kind: input, shape index: {}]   ;;  %s1084_s5 = inlined_call_operand.hbm [shape: f32[1,1], index: 5, kind: output, shape index: {}]  }
   0x1   :  { %v25_v0 = vld [vmem:[%s1081_s2 + $0x18] sm:$0xff]  ;;  %v24_v1 = vld [vmem:[%s1081_s2 + $0x10] sm:$0xff]  ;;  %v23_v2 = vld [vmem:[%s1081_s2 + $0x8] sm:$0xff]  ;;  %791 = vmatprep.subr.mxu0 %v916_v4  ;;  %799 = vmatprep.mubr.msk.f32.mxu0 %vm917_vm1, %v916_v4  ;;  %vm131_vm2 = vcmask 130048  }
   0x2   :  { %v103_v5 = vmul.f32 %v24_v1, %v24_v1  ;;  %v102_v6 = vmul.f32 %v23_v2, %v23_v2  ;;  %v22_v7 = vld [vmem:[%s1081_s2] sm:$0xff]  ;;  %792 = vmatpush3.msra.mxu0 %v25_v0  ;;  %v104_v9 = vmul.f32 %v25_v0, %v25_v0  ;;  %802 = vmatprep.subr.mxu1 %v916_v4  ;;  %v123_v12 = vshrl.u32 %v122_v3, 7 }
   0x3   :  { %v129_v8 = vld [vmem:[%s1082_s3] sm:$0xff]  ;;  %v101_v10 = vmul.f32 %v22_v7, %v22_v7  ;;  %793 = vmatprep.subr.mxu0 %v916_v4 }
   0x4   :  { %v107_v11 = vsel %vm105_vm0, %v102_v6, 0.0  ;;  %803 = vmatpush3.xpose.msk.msra.mxu1 %vm131_vm2, %v129_v8 }
   0x5   :  { %10 = vsyncpa [#allocation3], 0  ;;  %794 = vmatpush3.msra.mxu0 %v24_v1  ;;  %v109_v13 = vsel %vm105_vm0, %v103_v5, 0.0  ;;  %v106_v14 = vsel %vm105_vm0, %v101_v10, 0.0  ;;  %804 = vmatprep.mubr.msk.f32.mxu1 %vm917_vm1, %v916_v4  ;;  %v130_v15 = vld [vmem:[%s1083_s4] sm:$0xff]  ;;  %vm257_vm3 = vcmask 523264  }
   0x6   :  { %v125_v16 = vand.u32 127, %v122_v3  ;;  %795 = vmatprep.subr.mxu0 %v916_v4  ;;  %v108_v17 = vadd.f32 %v107_v11, %v106_v14  ;;  %807 = vmatprep.subr.mxu1 %v916_v4  ;;  %v111_v18 = vsel %vm105_vm0, %v104_v9, 0.0  ;;  %v21_v19 = vld [vmem:[%s1080_s1] sm:$0xff]  ;;  %vm27_vm4 = vcmask 261120   ;;  %s919_s10 = smov [#allocation2]  }
   0x7   :  { %796 = vmatpush3.msra.mxu0 %v23_v2  ;;  %805 = vmatmul.mubr.msk.f32.vlgmr.msra.gmra.mxu1 %vm131_vm2, %v129_v8  ;;  %v26_v21 = vld [vmem:[%s1079_s0] sm:$0xff]  ;;  %v918_v23 = vmov 0   ;;  %vm732_vm7 = vcmask 7168   ;;  %s755_s11 = sshll.u32 %s919_s10, 4  ;;  %vm747_vm8 = vcmask 0   ;;  %s756_s11 = int_to_ptr.vmem [resolvable:$true] %s755_s11 }
   0x8   :  { %vm126_vm5 = vcmp.eq.s32.totalorder %v123_v12, %v125_v16  ;;  %797 = vmatprep.subr.mxu0 %v916_v4  ;;  %v110_v20 = vadd.f32 %v109_v13, %v108_v17  ;;  %808 = vmatpush3.xpose.msk.msra.mxu1 %vm257_vm3, %v130_v15  ;;  %s894_s12 = scalar_lea.vmem %s756_s11, 16  ;;  %s898_s13 = scalar_lea.vmem %s756_s11, 32 }
   0x9   :  { %798 = vmatpush3.msra.mxu0 %v22_v7  ;;  %809 = vmatprep.mubr.msk.f32.mxu1 %vm917_vm1, %v916_v4  ;;  %v1015_v33 = vsel %vm126_vm5, 1.0, %v916_v4  ;;  %p895_p0 = scmp.ne.s32.totalorder %s756_s11, %s894_s12  ;;  %p899_p1 = scmp.lt.s32.totalorder %s756_s11, %s756_s11 }
   0xa   :  { %v112_v22 = vadd.f32 %v111_v18, %v110_v20  ;;  %800 = vmatmul.mubr.msk.f32.vlgmr.msra.gmra.mxu0 %vm27_vm4, %v21_v19  ;;  %843 = vset.pattern.permute.xlu0 %v918_v23  ;;  %p900_p2 = scmp.lt.s32.totalorder %s898_s13, %s894_s12 }
   0xb   :  { %810 = vmatmul.mubr.msk.f32.vlgmr.msra.gmra.mxu1 %vm257_vm3, %v130_v15  ;;  %608 = vperm.xlu0 %843, %v26_v21  }
   0xc   :  { %817 = vmatprep.subr.mxu1 %v916_v4  ;;  %819 = vmatprep.mubr.msk.f32.mxu1 %vm917_vm1, %v916_v4  ;;  %v113_v26 = vrot.slane %v112_v22, 4  ;;  %p901_p3 = por %p900_p2, %p899_p1 }
   0xd   :  { %812 = vmatprep.subr.mxu0 %v916_v4  ;;  %814 = vmatprep.mubr.msk.f32.mxu0 %vm917_vm1, %v916_v4 }
   0xe   :  { %813 = vmatpush3.xpose.msk.msra.mxu0 %vm27_vm4, %v21_v19  ;;  %v114_v27 = vadd.f32 %v113_v26, %v112_v22  ;;  %p902_p4 = pnand %p901_p3, %p895_p0 }
   0xf   :  { %822 = vmatprep.subr.mxu0 %v916_v4 }
  0x10   :  { %v115_v28 = vrot.slane %v114_v27, 2 }
  0x11   :  { %815 = vmatmul.mubr.msk.f32.vlgmr.msra.gmra.mxu0 %vm27_vm4, %v21_v19 }
  0x12   :  { %824 = vmatprep.mubr.msk.f32.mxu0 %vm917_vm1, %v916_v4  ;;  %v116_v29 = vadd.f32 %v115_v28, %v114_v27 }
  0x14   :  { %v117_v30 = vrot.slane %v116_v29, 1 }
  0x16   :  { %v118_v31 = vadd.f32 %v117_v30, %v116_v29 }
  0x18   :  { %v119_v32 = vmax.f32 %v118_v31, 1e-24 }
  0x1a   :  { %844 = vrsqrt.f32 %v119_v32 }
  0x27   :  { %v845_v35 = vpop.eup %844 }
  0x86   :  { %v609_v24 = vpop.permute.xlu0 %608 }
  0x87   :  { %vm610_vm6 = vcmp.eq.s32.totalorder %v125_v16, %v609_v24 }
  0x88   :  { %v1007_v25 = vsel %vm610_vm6, 1.0, %v916_v4 }
  0x89   :  { %823 = vmatpush3.xpose.msk.msra.mxu0 %vm105_vm0, %v1007_v25  ;;  %v712_v17 = vmul.f32 0.3, %v1007_v25 }
  0x8c   :  { %825 = vmatmul.mubr.msk.f32.vlgmr.msra.gmra.mxu0 %vm105_vm0, %v1007_v25 }
  0xc7   :  { %v201_v34 = vpop.f32.mrf.mxu1 }
  0xc8   :  { %v205_v36 = vmul.f32 %v1015_v33, %v201_v34  ;;  %v216_v57 = vmul.f32 2.0, %v201_v34 }
  0xc9   :  { %v806_v37 = vpop.f32.mrf.mxu1 }
  0xca   :  { %v97_v38 = vpop.f32.mrf.mxu0  ;;  %v206_v39 = vsel %vm105_vm0, %v205_v36, 0.0 }
  0xcb   :  { %v121_v40 = vmul.f32 %v845_v35, %v97_v38  ;;  %v327_v41 = vpop.f32.mrf.mxu1  ;;  %207 = vadd.xlane.f32.xlu0 %v206_v39  ;;  %v209_v46 = vrot.slane %v206_v39, 4 }
  0xcc   :  { %v801_v42 = vpop.f32.mrf.mxu0  ;;  %v331_v43 = vmul.f32 %v1015_v33, %v327_v41  ;;  %v342_v61 = vmul.f32 2.0, %v327_v41 }
  0xcd   :  { %818 = vmatpush3.xpose.msk.msra.mxu1 %vm105_vm0, %v121_v40  ;;  %v811_v44 = vpop.f32.mrf.mxu1  ;;  %v210_v47 = vadd.f32 %v209_v46, %v206_v39  ;;  %v713_v20 = vsub.f32 %v121_v40, %v712_v17 }
  0xce   :  { %v332_v45 = vsel %vm105_vm0, %v331_v43, 0.0 }
  0xcf   :  { %333 = vadd.xlane.f32.xlu1 %v332_v45  ;;  %v335_v48 = vrot.slane %v332_v45, 4  ;;  %v211_v49 = vrot.slane %v210_v47, 2  ;;  %v714_v28 = vmul.f32 30.0, %v713_v20 }
  0xd0   :  { %820 = vmatmul.mubr.msk.f32.vlgmr.msra.gmra.mxu1 %vm105_vm0, %v121_v40 }
  0xd1   :  { %v336_v50 = vadd.f32 %v335_v48, %v332_v45  ;;  %v212_v52 = vadd.f32 %v211_v49, %v210_v47  ;;  %v1033_v8 = vpop.f32.mrf.mxu0  ;;  %v715_v35 = vsel %vm105_vm0, %v714_v28, -inf }
  0xd2   :  { %v454_v30 = vmul.f32 %v1015_v33, %v1033_v8 }
  0xd3   :  { %v337_v51 = vrot.slane %v336_v50, 2  ;;  %v213_v53 = vrot.slane %v212_v52, 1  ;;  %v816_v9 = vpop.f32.mrf.mxu0 }
  0xd4   :  { %v455_v37 = vsel %vm105_vm0, %v454_v30, 0.0 }
  0xd5   :  { %v338_v54 = vadd.f32 %v337_v51, %v336_v50  ;;  %v214_v55 = vadd.f32 %v213_v53, %v212_v52 }
  0xd7   :  { %v339_v56 = vrot.slane %v338_v54, 1 }
  0xd9   :  { %v340_v60 = vadd.f32 %v339_v56, %v338_v54  ;;  %v727_v56 = vmul.f32 %v1007_v25, %v714_v28 }
 0x14c   :  { %v1035_v10 = vpop.f32.mrf.mxu0 }
 0x14e   :  { %v826_v11 = vpop.f32.mrf.mxu0 }
 0x154   :  { %v208_v58 = vpop.xlane.xlu0 %207 }
 0x155   :  { %v215_v59 = vadd.f32 %v214_v55, %v208_v58  ;;  %v728_v58 = vsel %vm105_vm0, %v727_v56, 0.0 }
 0x157   :  { %v1023_v62 = vsub.f32 %v215_v59, %v216_v57  ;;  %v686_v57 = vsub.f32 1.0, %v1035_v10 }
 0x158   :  { %v334_v63 = vpop.xlane.xlu1 %333 }
 0x159   :  { %v341_v0 = vadd.f32 %v340_v60, %v334_v63  ;;  %v218_v6 = vsel %vm105_vm0, %v1023_v62, 0.0  ;;  %v699_v59 = vsel %vm105_vm0, %v686_v57, 0.0 }
 0x15b   :  { %v1025_v1 = vsub.f32 %v341_v0, %v342_v61 }
 0x15d   :  { %v344_v7 = vsel %vm105_vm0, %v1025_v1, 0.0 }
 0x190   :  { %v550_v2 = vpop.f32.mrf.mxu1 }
 0x191   :  { %v554_v3 = vmul.f32 %v1015_v33, %v550_v2  ;;  %v565_v21 = vmul.f32 2.0, %v550_v2  ;;  %v458_v2 = vrot.slane %v455_v37, 4 }
 0x192   :  { %v821_v4 = vpop.f32.mrf.mxu1 }
 0x193   :  { %v555_v5 = vsel %vm105_vm0, %v554_v3, 0.0  ;;  %v459_v25 = vadd.f32 %v458_v2, %v455_v37 }
 0x194   :  { %556 = vadd.xlane.f32.xlu1 %v555_v5  ;;  %v558_v12 = vrot.slane %v555_v5, 4 }
 0x195   :  { %v460_v3 = vrot.slane %v459_v25, 2 }
 0x196   :  { %v559_v13 = vadd.f32 %v558_v12, %v555_v5 }
 0x197   :  { %v461_v4 = vadd.f32 %v460_v3, %v459_v25 }
 0x198   :  { %219 = vadd.xlane.f32.xlu1 %v218_v6  ;;  %v560_v14 = vrot.slane %v559_v13, 2 }
 0x19a   :  { %v561_v15 = vadd.f32 %v560_v14, %v559_v13 }
 0x19c   :  { %345 = vadd.xlane.f32.xlu1 %v344_v7  ;;  %v562_v16 = vrot.slane %v561_v15, 1  ;;  %v462_v7 = vrot.slane %v461_v4, 1 }
 0x19e   :  { %v563_v18 = vadd.f32 %v562_v16, %v561_v15  ;;  %v463_v14 = vadd.f32 %v462_v7, %v461_v4 }
 0x21d   :  { %v557_v19 = vpop.xlane.xlu1 %556 }
 0x21e   :  { %v564_v22 = vadd.f32 %v563_v18, %v557_v19 }
 0x220   :  { %v1038_v23 = vsub.f32 %v564_v22, %v565_v21 }
 0x221   :  { %v220_v24 = vpop.xlane.xlu1 %219 }
 0x222   :  { %v221_v26 = vrot.slane %v220_v24, 4  ;;  %v567_v27 = vsel %vm105_vm0, %v1038_v23, 0.0 }
 0x223   :  { %568 = vadd.xlane.f32.xlu1 %v567_v27 }
 0x224   :  { %v222_v29 = vadd.f32 %v221_v26, %v220_v24  ;;  %v465_v24 = vmul.f32 2.0, %v1033_v8 }
 0x225   :  { %v346_v31 = vpop.xlane.xlu1 %345 }
 0x226   :  { %v223_v32 = vrot.slane %v222_v29, 2  ;;  %v347_v34 = vrot.slane %v346_v31, 4 }
 0x227   :  { %716 = vmax.xlane.f32.xlu1 %v715_v35 }
 0x228   :  { %v348_v36 = vadd.f32 %v347_v34, %v346_v31  ;;  %v224_v38 = vadd.f32 %v223_v32, %v222_v29 }
 0x22a   :  { %v349_v39 = vrot.slane %v348_v36, 2  ;;  %v225_v40 = vrot.slane %v224_v38, 1 }
 0x22b   :  { %456 = vadd.xlane.f32.xlu1 %v455_v37 }
 0x22c   :  { %v226_v41 = vadd.f32 %v225_v40, %v224_v38  ;;  %v350_v42 = vadd.f32 %v349_v39, %v348_v36 }
 0x22e   :  { %827 = vpush %v226_v41  ;;  %v351_v43 = vrot.slane %v350_v42, 1 }
 0x230   :  { %v352_v44 = vadd.f32 %v351_v43, %v350_v42 }
 0x232   :  { %829 = vpush %v352_v44 }
 0x25f   :  { %s828_s0 = spop %827 }
 0x260   :  { %v228_v61 = vstv %s828_s0 }
 0x261   :  { %v229_v0 = vmul.f32 0.004464286, %v228_v61 }
 0x263   :  { %s830_s1 = spop %829 }
 0x264   :  { %v354_v60 = vstv %s830_s1 }
 0x265   :  { %v355_v63 = vmul.f32 0.004464286, %v354_v60 }
 0x2ac   :  { %v569_v33 = vpop.xlane.xlu1 %568 }
 0x2ad   :  { %v570_v45 = vrot.slane %v569_v33, 4 }
 0x2af   :  { %v571_v46 = vadd.f32 %v570_v45, %v569_v33 }
 0x2b0   :  { %v1046_v47 = vpop.xlane.xlu1 %716 }
 0x2b1   :  { %v572_v48 = vrot.slane %v571_v46, 2  ;;  %v718_v49 = vsub.f32 %v714_v28, %v1046_v47 }
 0x2b3   :  { %v719_v50 = vmul.f32 1.442695, %v718_v49  ;;  %v573_v51 = vadd.f32 %v572_v48, %v571_v46 }
 0x2b4   :  { %v457_v12 = vpop.xlane.xlu1 %456 }
 0x2b5   :  { %846 = vpow2.f32 %v719_v50  ;;  %v574_v52 = vrot.slane %v573_v51, 1  ;;  %v464_v17 = vadd.f32 %v463_v14, %v457_v12 }
 0x2b6   :  { %848 = vrcp.f32 %v355_v63 }
 0x2b7   :  { %v575_v53 = vadd.f32 %v574_v52, %v573_v51  ;;  %850 = vrcp.f32 %v229_v0  ;;  %v466_v30 = vsub.f32 %v464_v17, %v465_v24 }
 0x2b9   :  { %831 = vpush %v575_v53  ;;  %v467_v39 = vmul.f32 -2.0, %v466_v30  ;;  %v471_v42 = vmul.f32 -1.0, %v466_v30  ;;  %v475_v50 = vmul.f32 -0.5, %v466_v30 }
 0x2bb   :  { %v468_v45 = vmul.f32 1.442695, %v467_v39  ;;  %v472_v49 = vmul.f32 1.442695, %v471_v42  ;;  %v476_v60 = vmul.f32 1.442695, %v475_v50 }
 0x2c2   :  { %v847_v54 = vpop.eup %846 }
 0x2c3   :  { %v721_v55 = vsel %vm105_vm0, %v847_v54, 0.0  ;;  %v849_v5 = vpop.eup %848 }
 0x2c4   :  { %722 = vadd.xlane.f32.xlu1 %v721_v55  ;;  %v851_v6 = vpop.eup %850  ;;  %v357_v9 = vmul.f32 -1.0, %v849_v5  ;;  %v362_v11 = vmul.f32 -0.5, %v849_v5  ;;  %v367_v27 = vmul.f32 -0.25, %v849_v5  ;;  %v372_v29 = vmul.f32 -0.125, %v849_v5 }
 0x2c5   :  { %v231_v13 = vmul.f32 -1.0, %v851_v6  ;;  %v236_v15 = vmul.f32 -0.5, %v851_v6  ;;  %v241_v22 = vmul.f32 -0.25, %v851_v6  ;;  %v246_v37 = vmul.f32 -0.125, %v851_v6 }
 0x2c6   :  { %v358_v16 = vmul.f32 %v357_v9, %v1025_v1  ;;  %v363_v19 = vmul.f32 %v362_v11, %v1025_v1  ;;  %v368_v36 = vmul.f32 %v367_v27, %v1025_v1  ;;  %v373_v38 = vmul.f32 %v372_v29, %v1025_v1 }
 0x2c7   :  { %v232_v21 = vmul.f32 %v231_v13, %v1023_v62  ;;  %v237_v26 = vmul.f32 %v236_v15, %v1023_v62  ;;  %v242_v34 = vmul.f32 %v241_v22, %v1023_v62  ;;  %v251_v8 = vmul.f32 -0.0625, %v851_v6 }
 0x2c8   :  { %729 = vadd.xlane.f32.xlu1 %v728_v58  ;;  %v359_v28 = vmul.f32 1.442695, %v358_v16  ;;  %v364_v31 = vmul.f32 1.442695, %v363_v19  ;;  %v377_v40 = vmul.f32 -0.0625, %v849_v5  ;;  %v247_v44 = vmul.f32 %v246_v37, %v1023_v62 }
 0x2c9   :  { %v233_v32 = vmul.f32 1.442695, %v232_v21  ;;  %v238_v35 = vmul.f32 1.442695, %v237_v26  ;;  %v243_v41 = vmul.f32 1.442695, %v242_v34  ;;  %v252_v46 = vmul.f32 %v251_v8, %v1023_v62 }
 0x2ca   :  { %v369_v43 = vmul.f32 1.442695, %v368_v36  ;;  %v374_v33 = vmul.f32 1.442695, %v373_v38  ;;  %v378_v48 = vmul.f32 %v377_v40, %v1025_v1  ;;  %v248_v51 = vmul.f32 1.442695, %v247_v44 }
 0x2cb   :  { %v253_v53 = vmul.f32 1.442695, %v252_v46 }
 0x2cc   :  { %700 = vadd.xlane.f32.xlu1 %v699_v59  ;;  %v379_v54 = vmul.f32 1.442695, %v378_v48 }
 0x2ea   :  { %s832_s6 = spop %831 }
 0x2eb   :  { %v577_v18 = vstv %s832_s6 }
 0x2ec   :  { %v578_v20 = vmul.f32 0.004464286, %v577_v18 }
 0x2ee   :  { %852 = vrcp.f32 %v578_v20 }
 0x2ef   :  { %854 = vpow2.f32 %v359_v28 }
 0x2f0   :  { %856 = vpow2.f32 %v364_v31 }
 0x2f1   :  { %858 = vpow2.f32 %v233_v32 }
 0x2f2   :  { %860 = vpow2.f32 %v238_v35 }
 0x2f3   :  { %862 = vpow2.f32 %v243_v41 }
 0x2f4   :  { %864 = vpow2.f32 %v369_v43 }
 0x2f5   :  { %866 = vpow2.f32 %v374_v33 }
 0x2f6   :  { %868 = vpow2.f32 %v468_v45 }
 0x2f7   :  { %870 = vpow2.f32 %v472_v49 }
 0x2f8   :  { %872 = vpow2.f32 %v248_v51 }
 0x2f9   :  { %874 = vpow2.f32 %v253_v53 }
 0x2fa   :  { %876 = vpow2.f32 %v379_v54 }
 0x2fb   :  { %v853_v52 = vpop.eup %852  ;;  %878 = vpow2.f32 %v476_v60 }
 0x2fc   :  { %v580_v55 = vmul.f32 -1.0, %v853_v52  ;;  %v585_v56 = vmul.f32 -0.5, %v853_v52  ;;  %v590_v58 = vmul.f32 -0.25, %v853_v52  ;;  %v595_v59 = vmul.f32 -0.125, %v853_v52  ;;  %v855_v0 = vpop.eup %854 }
 0x2fd   :  { %v600_v61 = vmul.f32 -0.0625, %v853_v52  ;;  %v857_v25 = vpop.eup %856 }
 0x2fe   :  { %v581_v62 = vmul.f32 %v580_v55, %v1038_v23  ;;  %v586_v1 = vmul.f32 %v585_v56, %v1038_v23  ;;  %v591_v63 = vmul.f32 %v590_v58, %v1038_v23  ;;  %v596_v2 = vmul.f32 %v595_v59, %v1038_v23  ;;  %v859_v5 = vpop.eup %858 }
 0x2ff   :  { %v601_v7 = vmul.f32 %v600_v61, %v1038_v23  ;;  %v861_v9 = vpop.eup %860  ;;  %v366_v11 = vadd.f32 %v857_v25, %v855_v0 }
 0x300   :  { %v582_v3 = vmul.f32 1.442695, %v581_v62  ;;  %v587_v4 = vmul.f32 1.442695, %v586_v1  ;;  %v592_v6 = vmul.f32 1.442695, %v591_v63  ;;  %v863_v13 = vpop.eup %862  ;;  %v240_v14 = vadd.f32 %v861_v9, %v859_v5 }
 0x301   :  { %v597_v12 = vmul.f32 1.442695, %v596_v2  ;;  %v602_v15 = vmul.f32 1.442695, %v601_v7  ;;  %v865_v16 = vpop.eup %864 }
 0x302   :  { %880 = vpow2.f32 %v582_v3  ;;  %v867_v17 = vpop.eup %866  ;;  %v371_v18 = vadd.f32 %v865_v16, %v366_v11  ;;  %v245_v20 = vadd.f32 %v863_v13, %v240_v14 }
 0x303   :  { %882 = vpow2.f32 %v587_v4  ;;  %v869_v19 = vpop.eup %868 }
 0x304   :  { %884 = vpow2.f32 %v592_v6  ;;  %v871_v21 = vpop.eup %870  ;;  %v376_v24 = vadd.f32 %v867_v17, %v371_v18 }
 0x305   :  { %886 = vpow2.f32 %v597_v12  ;;  %v873_v22 = vpop.eup %872  ;;  %v474_v28 = vadd.f32 %v871_v21, %v869_v19 }
 0x306   :  { %888 = vpow2.f32 %v602_v15  ;;  %v875_v23 = vpop.eup %874  ;;  %v250_v27 = vadd.f32 %v873_v22, %v245_v20 }
 0x307   :  { %v877_v26 = vpop.eup %876 }
 0x308   :  { %v879_v29 = vpop.eup %878  ;;  %v381_v31 = vadd.f32 %v877_v26, %v376_v24  ;;  %v255_v34 = vadd.f32 %v875_v23, %v250_v27 }
 0x309   :  { %v478_v35 = vadd.f32 %v879_v29, %v474_v28 }
 0x30a   :  { %v382_v38 = vmul.f32 0.2, %v381_v31  ;;  %v256_v40 = vmul.f32 0.2, %v255_v34 }
 0x30b   :  { %v479_v41 = vmul.f32 0.33333334, %v478_v35 }
 0x30c   :  { %v383_v44 = vmul.f32 %v382_v38, %v256_v40 }
 0x30e   :  { %v480_v45 = vmul.f32 %v479_v41, %v383_v44 }
 0x30f   :  { %v881_v30 = vpop.eup %880 }
 0x310   :  { %v883_v32 = vpop.eup %882 }
 0x311   :  { %v589_v36 = vadd.f32 %v883_v32, %v881_v30  ;;  %v885_v37 = vpop.eup %884 }
 0x312   :  { %v887_v8 = vpop.eup %886 }
 0x313   :  { %v594_v39 = vadd.f32 %v885_v37, %v589_v36  ;;  %v889_v43 = vpop.eup %888 }
 0x315   :  { %v599_v42 = vadd.f32 %v887_v8, %v594_v39 }
 0x317   :  { %v604_v33 = vadd.f32 %v889_v43, %v599_v42 }
 0x319   :  { %v605_v46 = vmul.f32 0.2, %v604_v33 }
 0x31b   :  { %v606_v48 = vmul.f32 %v605_v46, %v480_v45 }
 0x31d   :  { %v687_v49 = vmul.f32 %v686_v57, %v606_v48 }
 0x31f   :  { %v688_v50 = vsel %vm105_vm0, %v687_v49, 0.0 }
 0x320   :  { %689 = vadd.xlane.f32.xlu0 %v688_v50 }
 0x34d   :  { %v723_v51 = vpop.xlane.xlu1 %722 }
 0x34e   :  { %890 = vlog2.f32 %v723_v51 }
 0x351   :  { %v730_v55 = vpop.xlane.xlu1 %729 }
 0x355   :  { %v701_v59 = vpop.xlane.xlu1 %700 }
 0x356   :  { %v702_v60 = vrot.slane %v701_v59, 4 }
 0x358   :  { %v703_v61 = vadd.f32 %v702_v60, %v701_v59 }
 0x35a   :  { %v704_v62 = vrot.slane %v703_v61, 2 }
 0x35b   :  { %v891_v52 = vpop.eup %890 }
 0x35c   :  { %v725_v53 = vmul.f32 0.6931472, %v891_v52  ;;  %v705_v63 = vadd.f32 %v704_v62, %v703_v61 }
 0x35e   :  { %v726_v54 = vadd.f32 %v725_v53, %v1046_v47  ;;  %v706_v25 = vrot.slane %v705_v63, 1 }
 0x360   :  { %v731_v56 = vsub.f32 %v726_v54, %v730_v55  ;;  %v707_v5 = vadd.f32 %v706_v25, %v705_v63 }
 0x362   :  { %v733_v58 = vsel %vm732_vm7, %v731_v56, 0.0 }
 0x363   :  { %734 = vadd.xlane.f32.xlu0 %v733_v58 }
 0x3a9   :  { %v690_v10 = vpop.xlane.xlu0 %689 }
 0x3aa   :  { %v691_v57 = vrot.slane %v690_v10, 4 }
 0x3ac   :  { %v692_v1 = vadd.f32 %v691_v57, %v690_v10 }
 0x3ae   :  { %v693_v0 = vrot.slane %v692_v1, 2 }
 0x3b0   :  { %v694_v2 = vadd.f32 %v693_v0, %v692_v1 }
 0x3b2   :  { %v695_v3 = vrot.slane %v694_v2, 1 }
 0x3b4   :  { %v696_v4 = vadd.f32 %v695_v3, %v694_v2 }
 0x3b6   :  { %833 = vpush %v696_v4 }
 0x3b7   :  { %835 = vpush %v707_v5 }
 0x3e7   :  { %s834_s7 = spop %833 }
 0x3e8   :  { %s836_s8 = spop %835  ;;  %v698_v16 = vstv %s834_s7 }
 0x3e9   :  { %v709_v14 = vstv %s836_s8 }
 0x3ea   :  { %892 = vrcp.f32 %v709_v14 }
 0x3ec   :  { %v735_v47 = vpop.xlane.xlu0 %734 }
 0x3ed   :  { %v736_v6 = vrot.slane %v735_v47, 4 }
 0x3ef   :  { %v737_v7 = vadd.f32 %v736_v6, %v735_v47 }
 0x3f1   :  { %v738_v9 = vrot.slane %v737_v7, 2 }
 0x3f3   :  { %v739_v11 = vadd.f32 %v738_v9, %v737_v7 }
 0x3f5   :  { %v740_v12 = vrot.slane %v739_v11, 1 }
 0x3f7   :  { %v741_v13 = vadd.f32 %v740_v12, %v739_v11  ;;  %v893_v15 = vpop.eup %892 }
 0x3f8   :  { %v711_v17 = vmul.f32 %v893_v15, %v698_v16 }
 0x3f9   :  { %837 = vpush %v741_v13 }
 0x3fa   :  { %v745_v20 = vmul.f32 0.1, %v711_v17 }
 0x42a   :  { %s838_s9 = spop %837 }
 0x42b   :  { %v743_v18 = vstv %s838_s9 }
 0x42c   :  { %v744_v19 = vmul.f32 0.125, %v743_v18 }
 0x42e   :  { %v746_v21 = vadd.f32 %v745_v20, %v744_v19 }
 0x430   :  { %748 = vst.msk [vmem:[#allocation2] sm:$0x1] %vm747_vm8, %v746_v21 }
 0x431   :  { %905 = shalt.err (!%p902_p4)
}
 0x432   :  { %758 = dma.vmem_to_hbm [thread:$0]  %s756_s11, 16, %s1084_s5, [#allocation3]  }
 0x433   :  { %914 = dma.done.wait [#allocation3], 16  }
 0x434   :  { %915 = vsyncadd [#allocation3], 4294967280 }
 0x435   :  { %762 = vsyncpa [#allocation3], 1 }

</bundles_post_ra>
